<compile_context>
chip_gen: v6e
topology: v6e:2x2x1
jax: 0.10.0
libtpu: 0.0.40
codegen_flags: <defaults>
</compile_context>

<pallas_src>
import jax
import jax.numpy as jnp
from jax.experimental import pallas as pl
from jax.experimental.pallas import tpu as pltpu


def _cast_kernel(x_ref, o_ref):
    # Pure elementwise cast on the VPU (value-preserving, same as torch .type()).
    o_ref[...] = x_ref[...].astype(o_ref.dtype)


# Preferred lane-dense trailing widths (all multiples of 128); widest that divides wins.
_LANE_CANDIDATES = (8192, 4096, 2048, 1024, 512, 256, 128)

_MIB = 1024 * 1024


class _Plan:
    def __init__(self, block_bytes, small_bytes, min_steps):
        self.block_bytes = block_bytes    # target (input + output) bytes per block
        self.small_bytes = small_bytes    # below this input size, skip the kernel
        self.min_steps = min_steps        # minimum grid steps for pipelining/megacore


def _tpu_plan():
    """Generation-aware tiling plan, chosen at trace time from the device kind."""
    kind = ""
    try:
        kind = jax.devices()[0].device_kind.lower()
    except Exception:  # no devices / unusual backend: fall through to the safe default
        pass
    if "v7" in kind:
        # 64 MiB physical VMEM: cap double-buffered (in+out) footprint at ~24-28 MiB,
        # and require >= 2 blocks per TensorCore (grid split across 2 TCs).
        return _Plan(block_bytes=12 * _MIB, small_bytes=2 * _MIB, min_steps=4)
    if "v6" in kind:
        # 128 MiB physical VMEM: bigger blocks shave per-step overhead.
        return _Plan(block_bytes=13 * _MIB, small_bytes=1 * _MIB, min_steps=2)
    if "v5" in kind:
        # Keep the conservative budget: 12 MiB double-buffered already sits near the
        # 16 MiB default scoped VMEM once Mosaic internal scratch is counted.
        return _Plan(block_bytes=6 * _MIB, small_bytes=512 * 1024, min_steps=2)
    # Unknown / older generation: conservative defaults.
    return _Plan(block_bytes=6 * _MIB, small_bytes=512 * 1024, min_steps=2)


def _sublane_tile(itemsize):
    """Native sublane tile rows for a dtype of the given byte width."""
    if itemsize >= 4:
        return 8           # f32 / i32
    return (4 // itemsize) * 8   # 16 for bf16/f16, 32 for int8/fp8


def _choose_block_rows(rows, lane, in_item, out_item, plan):
    """Rows per block.

    Targets plan.block_bytes of (input + output) per block, rounds to the packed
    sublane tile of the wider-packed dtype, guarantees >= plan.min_steps grid
    steps when the array is big enough, and prefers an exact divisor of `rows`
    so the last grid step is not a masked partial block.
    """
    sub = max(_sublane_tile(in_item), _sublane_tile(out_item))
    if rows <= sub:
        return rows  # block == full dim: always legal, single step

    per_row_bytes = lane * (in_item + out_item)
    budget_tr = max(sub, (plan.block_bytes // per_row_bytes) // sub * sub)

    # Cap block size so the grid has at least plan.min_steps steps (keeps the
    # in-DMA / out-DMA pipeline alive and gives >=1 block per TensorCore, or
    # >=2 per TC on v7x).
    steps_cap = (rows // plan.min_steps) // sub * sub
    if steps_cap >= sub:
        tr = min(budget_tr, steps_cap)
    else:
        tr = sub  # small array: sub-sized blocks still give >1 step
    tr = min(tr, rows)

    # Prefer a nearby tr that divides rows evenly -> no masked epilogue block.
    t = tr
    lo = max(sub, tr - 8 * sub)
    while t >= lo:
        if rows % t == 0:
            return t
        t -= sub
    return tr


def tensor_type_cast(h, dst_dtype=jnp.bfloat16, *, force_kernel=False):
    """Cast `h` (any shape, e.g. NCHW) to dst_dtype. Same semantics as h.type(dtype)."""
    dst_dtype = jnp.dtype(dst_dtype)
    orig_shape = h.shape
    total = h.size
    in_item = jnp.dtype(h.dtype).itemsize
    out_item = dst_dtype.itemsize

    if total == 0 or h.dtype == dst_dtype:
        return h.astype(dst_dtype)

    plan = _tpu_plan()

    # Small-tensor fast path: XLA's fused convert beats a kernel launch here.
    if not force_kernel and total * in_item < plan.small_bytes:
        return h.astype(dst_dtype)

    # Pick the widest lane-dense trailing width that divides the element count,
    # so the 2D view below is a pure metadata reshape (no padding copies).
    lane = None
    for c in _LANE_CANDIDATES:
        if total % c == 0:
            lane = c
            break
    if lane is None:
        # TODO(synk): element count not a multiple of 128 -> no copy-free lane-aligned
        # view exists; fall back to XLA's convert rather than paying an extra full HBM
        # read+write just to pad.
        return h.astype(dst_dtype)

    rows = total // lane
    tr = _choose_block_rows(rows, lane, in_item, out_item, plan)
    grid = (pl.cdiv(rows, tr),)  # Pallas masks any partial last block itself

    # Explicit scoped-VMEM budget: actual double-buffered footprint + headroom for
    # Mosaic internal scratch (never below the 16 MiB v5e default).
    block_bytes_actual = tr * lane * (in_item + out_item)
    vmem_limit = max(2 * block_bytes_actual + 4 * _MIB, 16 * _MIB)

    x2d = h.reshape(rows, lane)  # metadata-only reshape: rows * lane == total

    out2d = pl.pallas_call(
        _cast_kernel,
        out_shape=jax.ShapeDtypeStruct((rows, lane), dst_dtype),
        grid_spec=pltpu.PrefetchScalarGridSpec(
            num_scalar_prefetch=0,
            grid=grid,
            in_specs=[pl.BlockSpec((tr, lane), lambda i: (i, 0))],
            out_specs=pl.BlockSpec((tr, lane), lambda i: (i, 0)),
        ),
        compiler_params=pltpu.CompilerParams(
            dimension_semantics=("parallel",),
            vmem_limit_bytes=int(vmem_limit),
        ),
        cost_estimate=pl.CostEstimate(
            flops=0,
            transcendentals=0,
            bytes_accessed=int(total) * (in_item + out_item),
        ),
    )(x2d)

    # No padding was ever applied, so this is a metadata-only reshape (no slice copy).
    return out2d.reshape(orig_shape)


if __name__ == "__main__":
    key = jax.random.PRNGKey(0)
    k1, k2 = jax.random.split(key)

    # 1) Spec-consistent small NCHW input (batch=2, channels=4, 16x16), forced
    #    through the Pallas kernel so the kernel path itself is exercised.
    x_small = jax.random.normal(k1, (2, 4, 16, 16), dtype=jnp.float32)
    y_small = jax.block_until_ready(
        tensor_type_cast(x_small, jnp.bfloat16, force_kernel=True)
    )
    ref_small = x_small.astype(jnp.bfloat16)
    assert y_small.shape == x_small.shape
    assert y_small.dtype == jnp.bfloat16
    assert bool(jnp.all(y_small == ref_small))

    # 2) Small-tensor fast path (no force): skips pallas_call, same result.
    y_fast = jax.block_until_ready(tensor_type_cast(x_small, jnp.bfloat16))
    assert y_fast.dtype == jnp.bfloat16
    assert bool(jnp.all(y_fast == ref_small))

    # 3) Larger input that exercises the big-block, multi-grid-step path
    #    (lane = 8192, rows = 256; >= 2 steps, >= 4 on v7x).
    x_big = jax.random.normal(k2, (8, 32, 64, 128), dtype=jnp.float32)
    y_big = jax.block_until_ready(tensor_type_cast(x_big, jnp.bfloat16))
    ref_big = x_big.astype(jnp.bfloat16)
    assert y_big.shape == x_big.shape
    assert y_big.dtype == jnp.bfloat16
    assert bool(jnp.all(y_big == ref_big))

    # 4) Element count not divisible by 128 -> clean fallback, same semantics.
    x_odd = jax.random.normal(k1, (3, 5, 7, 11), dtype=jnp.float32)
    y_odd = jax.block_until_ready(tensor_type_cast(x_odd, jnp.bfloat16))
    assert y_odd.shape == x_odd.shape
    assert y_odd.dtype == jnp.bfloat16
    assert bool(jnp.all(y_odd == x_odd.astype(jnp.bfloat16)))

    # 5) Narrow->wide direction (bf16 -> float32) through the kernel path.
    y_back = jax.block_until_ready(
        tensor_type_cast(y_big, jnp.float32, force_kernel=True)
    )
    assert y_back.dtype == jnp.float32
    assert bool(jnp.all(y_back == ref_big.astype(jnp.float32)))

    print("KERNEL_OK")
</pallas_src>

<mosaic_0001>
module attributes {stable_mosaic.version = 11 : i64} {
  func.func @_cast_kernel(%arg0: i32, %arg1: memref<1x2048xf32, #tpu.memory_space<vmem>>, %arg2: memref<1x2048xbf16, #tpu.memory_space<vmem>>) attributes {dimension_semantics = [#tpu.dimension_semantics<parallel>], iteration_bounds = array<i64: 1>, scalar_prefetch = 0 : i64, scratch_operands = 0 : i64, tpu.core_type = #tpu.core_type<tc>, window_params = [{transform_indices = @transform_0, window_bounds = array<i64: 1, 2048>}, {transform_indices = @transform_1, window_bounds = array<i64: 1, 2048>}]} {
    %c0 = arith.constant 0 : index
    %c0_0 = arith.constant 0 : index
    %0 = vector.load %arg1[%c0, %c0_0] : memref<1x2048xf32, #tpu.memory_space<vmem>>, vector<1x2048xf32>
    %1 = arith.truncf %0 : vector<1x2048xf32> to vector<1x2048xbf16>
    %c0_1 = arith.constant 0 : index
    %c0_2 = arith.constant 0 : index
    %2 = vector.load %arg2[%c0_1, %c0_2] : memref<1x2048xbf16, #tpu.memory_space<vmem>>, vector<1x2048xbf16>
    tpu.vector_store %arg2[%c0_1, %c0_2], %1 {strides = array<i32>} : memref<1x2048xbf16, #tpu.memory_space<vmem>>, vector<1x2048xbf16>,
    return
  }
  func.func @transform_0(%arg0: i32) -> (i32, i32) {
    %c0_i32 = arith.constant 0 : i32
    %c0_i32_0 = arith.constant 0 : i32
    return %arg0, %c0_i32 : i32, i32
  }
  func.func @transform_1(%arg0: i32) -> (i32, i32) {
    %c0_i32 = arith.constant 0 : i32
    %c0_i32_0 = arith.constant 0 : i32
    return %arg0, %c0_i32 : i32, i32
  }
}

</mosaic_0001>

<bundles_post_ra>
// kernel: tpu_custom_call.1
= control target key start
LH: loop header
LB: loop body
LE: loop exit
PB: predicated region body
PF: predicated region fallthrough
CT: control target
= control target key end

     0   :  { %6 = vsyncpa [#allocation3], 0  ;;  %s423_s0 = inlined_call_operand.hbm [shape: f32[1,2048], index: 0, kind: input, shape index: {}]   ;;  %s424_s1 = inlined_call_operand.hbm [shape: bf16[1,2048], index: 1, kind: output, shape index: {}]  }
   0x1   :  { %7 = vsyncpa [#allocation4], 0  ;;  %s344_s6 = smov [#allocation2]  }
   0x2   :  { %s14_s7 = sshll.u32 %s344_s6, 4  ;;  %s15_s7 = int_to_ptr.vmem [resolvable:$true] %s14_s7 }
   0x3   :  { %s308_s8 = scalar_lea.vmem %s15_s7, 256  ;;  %p313_p1 = scmp.lt.s32.totalorder %s15_s7, %s15_s7 }
   0x4   :  { %p309_p0 = scmp.ne.s32.totalorder %s15_s7, %s308_s8  ;;  %p314_p2 = scmp.lt.s32.totalorder %s308_s8, %s308_s8 }
   0x6   :  { %p315_p3 = por %p314_p2, %p313_p1 }
   0x8   :  { %p316_p4 = pnand %p315_p3, %p309_p0 }
   0xa   :  { %319 = shalt.err (!%p316_p4)
}
   0xb   :  { %17 = dma.hbm_to_vmem [thread:$0]  %s423_s0, 256, %s15_s7, [#allocation3]  }
   0xc   :  { %340 = dma.done.wait [#allocation3], 256  }
   0xd   :  { %341 = vsyncadd [#allocation3], 4294967040  ;;  %v25_v0 = vlaneseq  ;;  %vm237_vm0 = vcmask 1040384   ;;  %vm240_vm1 = vcmask 1041409   ;;  %v345_v1 = vmov 1966171168  }
   0xe   :  { %v142_v2 = vunpack.c.l.s4 %v345_v1  ;;  %vm238_vm2 = vsmask.f32 256  ;;  %vm241_vm3 = vsmask.f32 1280  ;;  %vm244_vm5 = vcmask 1042434   ;;  %v21_v16 = vld [vmem:[#allocation2] sm:$0xff] }
   0xf   :  { %v26_v3 = vshrl.u32 %v25_v0, 7  ;;  %vm360_vm4 = vmand %vm237_vm0, %vm238_vm2  ;;  %vm245_vm6 = vsmask.f32 2304  ;;  %vm248_vm8 = vcmask 1043459   ;;  %vm249_vm9 = vsmask.f32 3328 }
  0x10   :  { %v143_v5 = vunpack.c.0.s8 %v142_v2  ;;  %vm364_vm7 = vmand %vm240_vm1, %vm241_vm3  ;;  %vm252_vm10 = vcmask 1044484   ;;  %vm253_vm14 = vsmask.f32 4352  ;;  %vm256_vm15 = vcmask 1045509   ;;  %v22_v23 = vld [vmem:[#allocation2 + $0x8] sm:$0xff]  ;;  %v268_v60 = vld [vmem:[#allocation5] sm:$0xff] }
  0x11   :  { %v27_v7 = vsub.s32 0, %v26_v3  ;;  %v31_v8 = vsub.s32 1, %v26_v3  ;;  %v35_v9 = vsub.s32 2, %v26_v3  ;;  %v39_v10 = vsub.s32 3, %v26_v3  ;;  %vm243_vm11 = vmor %vm364_vm7, %vm360_vm4  ;;  %s346_s0 = smov [#allocation5]  }
  0x12   :  { %v43_v11 = vsub.s32 4, %v26_v3  ;;  %v47_v12 = vsub.s32 5, %v26_v3  ;;  %v51_v13 = vsub.s32 6, %v26_v3  ;;  %v55_v14 = vsub.s32 7, %v26_v3  ;;  %vm246_vm12 = vmand %vm244_vm5, %vm245_vm6  ;;  %s280_s11 = sshll.u32 %s346_s0, 4  ;;  %s281_s11 = int_to_ptr.vmem [resolvable:$true] %s280_s11 }
  0x13   :  { %vm374_vm13 = vmor %vm246_vm12, %vm243_vm11  ;;  %vm257_vm0 = vsmask.f32 5376  ;;  %vm260_vm1 = vcmask 1046534   ;;  %v146_v17 = vsub.s32 %v143_v5, %v26_v3  ;;  %vm261_vm3 = vsmask.f32 6400  ;;  %v271_v3 = vld [vmem:[#allocation5 + $0x8] sm:$0xff]  ;;  %p325_p6 = scmp.lt.s32.totalorder %s281_s11, %s281_s11 }
  0x14   :  { %vm380_vm2 = vmand %vm248_vm8, %vm249_vm9  ;;  %vm264_vm4 = vcmask 1047559   ;;  %vm265_vm7 = vsmask.f32 7424  ;;  %v28_v19 = vrot.slane %v21_v16, %v27_v7  ;;  %v32_v20 = vrot.slane %v21_v16, %v31_v8  ;;  %s320_s12 = scalar_lea.vmem %s281_s11, 256 }
  0x15   :  { %v36_v21 = vrot.slane %v21_v16, %v35_v9  ;;  %v40_v22 = vrot.slane %v21_v16, %v39_v10  ;;  %vm251_vm5 = vmor %vm380_vm2, %vm374_vm13  ;;  %v44_v24 = vrot.slane %v21_v16, %v43_v11  ;;  %v48_v25 = vrot.slane %v21_v16, %v47_v12  ;;  %p321_p5 = scmp.ne.s32.totalorder %s281_s11, %s320_s12  ;;  %p326_p7 = scmp.lt.s32.totalorder %s320_s12, %s320_s12 }
  0x16   :  { %v52_v26 = vrot.slane %v21_v16, %v51_v13  ;;  %v56_v27 = vrot.slane %v21_v16, %v55_v14  ;;  %vm254_vm6 = vmand %vm252_vm10, %vm253_vm14  ;;  %v289_v28 = vpack.c.bf16 %v32_v20, %v28_v19  ;;  %v60_v31 = vrot.slane %v22_v23, %v27_v7 }
  0x17   :  { %v290_v29 = vpack.c.bf16 %v40_v22, %v36_v21  ;;  %vm390_vm8 = vmor %vm254_vm6, %vm251_vm5  ;;  %v64_v32 = vrot.slane %v22_v23, %v31_v8  ;;  %v291_v33 = vpack.c.bf16 %v48_v25, %v44_v24  ;;  %v68_v36 = vrot.slane %v22_v23, %v35_v9  ;;  %p327_p8 = por %p326_p7, %p325_p6 }
  0x18   :  { %v292_v34 = vpack.c.bf16 %v56_v27, %v52_v26  ;;  %vm396_vm9 = vmand %vm256_vm15, %vm257_vm0  ;;  %v72_v37 = vrot.slane %v22_v23, %v39_v10  ;;  %v147_v38 = vrot.slane %v289_v28, %v146_v17  ;;  %v76_v40 = vrot.slane %v22_v23, %v43_v11 }
  0x19   :  { %v154_v39 = vrot.slane %v290_v29, %v146_v17  ;;  %vm259_vm10 = vmor %vm396_vm9, %vm390_vm8  ;;  %v80_v41 = vrot.slane %v22_v23, %v47_v12  ;;  %v161_v42 = vrot.slane %v291_v33, %v146_v17  ;;  %v84_v44 = vrot.slane %v22_v23, %v51_v13  ;;  %p328_p9 = pnand %p327_p8, %p321_p5 }
  0x1a   :  { %v168_v43 = vrot.slane %v292_v34, %v146_v17  ;;  %vm262_vm11 = vmand %vm260_vm1, %vm261_vm3  ;;  %v88_v45 = vrot.slane %v22_v23, %v55_v14  ;;  %v293_v48 = vpack.c.bf16 %v64_v32, %v60_v31  ;;  %v294_v49 = vpack.c.bf16 %v72_v37, %v68_v36 }
  0x1b   :  { %v169_v46 = vcombine.low %v147_v38, %v154_v39  ;;  %vm406_vm12 = vmor %vm262_vm11, %vm259_vm10  ;;  %v295_v50 = vpack.c.bf16 %v80_v41, %v76_v40 }
  0x1c   :  { %v170_v51 = vcombine.low %v161_v42, %v168_v43  ;;  %vm412_vm13 = vmand %vm264_vm4, %vm265_vm7  ;;  %v296_v53 = vpack.c.bf16 %v88_v45, %v84_v44  ;;  %v196_v55 = vrot.slane %v293_v48, %v146_v17  ;;  %v203_v56 = vrot.slane %v294_v49, %v146_v17 }
  0x1d   :  { %v177_v54 = vrot.slane %v169_v46, %v146_v17  ;;  %v210_v57 = vrot.slane %v295_v50, %v146_v17  ;;  %vm267_vm14 = vmor %vm412_vm13, %vm406_vm12 }
  0x1e   :  { %v184_v58 = vrot.slane %v170_v51, %v146_v17  ;;  %v217_v59 = vrot.slane %v296_v53, %v146_v17  ;;  %v218_v61 = vcombine.low %v196_v55, %v203_v56 }
  0x20   :  { %v185_v62 = vcombine.low %v177_v54, %v184_v58  ;;  %v219_v63 = vcombine.low %v210_v57, %v217_v59  ;;  %v226_v0 = vrot.slane %v218_v61, %v146_v17 }
  0x22   :  { %v269_v1 = vsel %vm267_vm14, %v185_v62, %v268_v60  ;;  %v233_v2 = vrot.slane %v219_v63, %v146_v17 }
  0x23   :  { %270 = vst [vmem:[#allocation5] sm:$0xff] %v269_v1 }
  0x24   :  { %v234_v4 = vcombine.low %v226_v0, %v233_v2 }
  0x26   :  { %v272_v5 = vsel %vm267_vm14, %v234_v4, %v271_v3 }
  0x27   :  { %273 = vst [vmem:[#allocation5 + $0x8] sm:$0xff] %v272_v5 }
  0x28   :  { %331 = shalt.err (!%p328_p9)
}
  0x29   :  { %283 = dma.vmem_to_hbm [thread:$0]  %s281_s11, 256, %s424_s1, [#allocation4]  }
  0x2a   :  { %342 = dma.done.wait [#allocation4], 256  }
  0x2b   :  { %343 = vsyncadd [#allocation4], 4294967040 }
  0x2c   :  { %287 = vsyncpa [#allocation3], 1 }
  0x2d   :  { %288 = vsyncpa [#allocation4], 1 }

</bundles_post_ra>
